<compile_context>
chip_gen: v6e
topology: v6e:2x2x1
jax: 0.10.0
libtpu: 0.0.40
codegen_flags: <defaults>
</compile_context>

<pallas_src>
import functools

import jax
import jax.numpy as jnp
from jax import lax
from jax.experimental import pallas as pl
from jax.experimental.pallas import tpu as pltpu


def _embed_kernel(tok_idx_ref,        # SMEM (bs*seq,) int32 — scalar prefetch
                  tok_emb_hbm,        # HBM  (V, D)   — memory_space=pl.ANY
                  pos_ref,            # VMEM (block_q, D)
                  *rest,
                  seq_len, vocab_size, block_q, dropout_p, training):
    use_dropout = training and dropout_p > 0.0
    if use_dropout:
        rand_ref, out_ref, gather_buf, sem = rest
    else:
        rand_ref = None
        out_ref, gather_buf, sem = rest

    b = pl.program_id(0)
    q = pl.program_id(1)
    base = b * seq_len + q * block_q
    n_tok = tok_idx_ref.shape[0]

    # Phase 1: launch all row-gather DMAs (HBM row -> VMEM scratch row).
    # Keeping them all in flight lets the DMA engine overlap the fetches.
    def start_row(s, carry):
        flat = jnp.minimum(base + s, n_tok - 1)       # guard any padded tail
        idx = tok_idx_ref[flat]
        idx = jnp.clip(idx, 0, vocab_size - 1)        # OOB token-id safety
        pltpu.make_async_copy(tok_emb_hbm.at[idx], gather_buf.at[s], sem).start()
        return carry

    lax.fori_loop(0, block_q, start_row, 0)

    # Phase 2: wait for all of them (the wait descriptor only needs shapes/sem).
    def wait_row(s, carry):
        pltpu.make_async_copy(tok_emb_hbm.at[0], gather_buf.at[s], sem).wait()
        return carry

    lax.fori_loop(0, block_q, wait_row, 0)

    # Phase 3: one vectorized block add (+ fused dropout) and ONE block store.
    vals = gather_buf[...].astype(jnp.float32) + pos_ref[...].astype(jnp.float32)
    if rand_ref is not None:
        scale = 1.0 / (1.0 - dropout_p)
        vals = jnp.where(rand_ref[...] >= dropout_p, vals * scale, 0.0)
    out_ref[...] = vals.astype(out_ref.dtype)


def gpt_input_embedding(tok_idx, tok_emb, pos_emb, *, dropout_p=0.0,
                        training=False, rng_key=None, block_q=128):
    """Forward pass of gpt_input_Embedding.

    tok_idx: (bs, seq) int; tok_emb: (V, D); pos_emb: (C, D), seq <= C.
    Returns (bs, seq, D) in tok_emb.dtype.  Dropout is identity unless
    training=True and dropout_p > 0 (inverted dropout, like nn.Dropout).
    """
    bs, seq_len = tok_idx.shape
    V, D = tok_emb.shape
    C, Dp = pos_emb.shape
    assert D == Dp, "embed_dim mismatch between token and positional tables"
    assert seq_len <= C, "seq_len must be <= context_length"
    assert seq_len % 8 == 0, "seq_len must be a multiple of 8 (sublane tiling)"
    assert 0.0 <= dropout_p < 1.0, "dropout_p must be in [0, 1)"

    # Largest multiple-of-8 tile <= block_q that divides seq_len.
    block_q = min(block_q, seq_len)
    block_q -= block_q % 8
    while seq_len % block_q:
        block_q -= 8
    num_q = seq_len // block_q

    use_dropout = training and dropout_p > 0.0

    kernel = functools.partial(
        _embed_kernel, seq_len=seq_len, vocab_size=V, block_q=block_q,
        dropout_p=float(dropout_p), training=training)

    in_specs = [
        # Token table stays in HBM — gathered row-by-row via manual DMA.
        pl.BlockSpec(memory_space=pl.ANY),
        # Positional table: only the rows used by this seq tile.
        pl.BlockSpec((block_q, D), lambda b, q, tok: (q, 0)),
    ]
    operands = [tok_emb, pos_emb]

    if use_dropout:
        if rng_key is None:
            rng_key = jax.random.PRNGKey(0)
        rand = jax.random.uniform(rng_key, (bs, seq_len, D), jnp.float32)
        in_specs.append(
            pl.BlockSpec((None, block_q, D), lambda b, q, tok: (b, q, 0)))
        operands.append(rand)

    grid_spec = pltpu.PrefetchScalarGridSpec(
        num_scalar_prefetch=1,                      # flattened tok_idx -> SMEM
        grid=(bs, num_q),
        in_specs=in_specs,
        out_specs=pl.BlockSpec((None, block_q, D), lambda b, q, tok: (b, q, 0)),
        scratch_shapes=[
            pltpu.VMEM((block_q, D), tok_emb.dtype),   # gathered rows
            pltpu.SemaphoreType.DMA(()),               # shared DMA semaphore
        ],
    )

    return pl.pallas_call(
        kernel,
        out_shape=jax.ShapeDtypeStruct((bs, seq_len, D), tok_emb.dtype),
        grid_spec=grid_spec,
        compiler_params=pltpu.CompilerParams(
            dimension_semantics=("parallel", "parallel"),
            vmem_limit_bytes=32 * 1024 * 1024),
    )(tok_idx.reshape(-1).astype(jnp.int32), *operands)


if __name__ == "__main__":
    # Small config consistent with the module's __init__.
    config = dict(vocab_size=64, embed_dim=128, context_length=16,
                  input_embed_dropout=0.1)
    bs, seq_len = 2, 8

    key = jax.random.PRNGKey(0)
    k_tok, k_pos, k_idx, k_drop = jax.random.split(key, 4)

    # Deterministic parameter init (nn.Embedding default: N(0, 1)).
    tok_emb = jax.random.normal(
        k_tok, (config["vocab_size"], config["embed_dim"]), jnp.float32)
    pos_emb = jax.random.normal(
        k_pos, (config["context_length"], config["embed_dim"]), jnp.float32)
    tok_idx = jax.random.randint(
        k_idx, (bs, seq_len), 0, config["vocab_size"], jnp.int32)

    # Eval-mode forward (dropout is identity, as in module.eval()).
    out = gpt_input_embedding(tok_idx, tok_emb, pos_emb,
                              dropout_p=config["input_embed_dropout"],
                              training=False)
    out = jax.block_until_ready(out)

    # Pure-JAX reference.
    ref = tok_emb[tok_idx] + pos_emb[:seq_len][None, :, :]
    assert out.shape == (bs, seq_len, config["embed_dim"])
    assert jnp.allclose(out, ref, atol=1e-6, rtol=1e-6)

    # Training-mode forward: in-kernel fused inverted dropout, driven by the
    # same precomputed uniforms as the reference -> should match exactly.
    p = config["input_embed_dropout"]
    out_train = gpt_input_embedding(tok_idx, tok_emb, pos_emb, dropout_p=p,
                                    training=True, rng_key=k_drop)
    out_train = jax.block_until_ready(out_train)
    rand = jax.random.uniform(k_drop, (bs, seq_len, config["embed_dim"]),
                              jnp.float32)
    ref_train = jnp.where(rand >= p, ref * (1.0 / (1.0 - p)), 0.0)
    assert jnp.allclose(out_train, ref_train, atol=1e-6, rtol=1e-6)

    print("KERNEL_OK")
</pallas_src>

<mosaic_0001>
module attributes {stable_mosaic.version = 11 : i64} {
  func.func @_embed_kernel(%arg0: i32, %arg1: i32, %arg2: memref<16xi32, #tpu.memory_space<smem>>, %arg3: memref<64x128xf32, #tpu.memory_space<any>>, %arg4: memref<8x128xf32, #tpu.memory_space<vmem>>, %arg5: memref<1x8x128xf32, #tpu.memory_space<vmem>>, %arg6: memref<8x128xf32, #tpu.memory_space<vmem>>, %arg7: memref<!tpu.dma_semaphore, #tpu.memory_space<semaphore_mem>>) attributes {dimension_semantics = [#tpu.dimension_semantics<parallel>, #tpu.dimension_semantics<parallel>], iteration_bounds = array<i64: 2, 1>, scalar_prefetch = 1 : i64, scratch_operands = 2 : i64, tpu.core_type = #tpu.core_type<tc>, window_params = [{}, {transform_indices = @transform_1, window_bounds = array<i64: 8, 128>}, {transform_indices = @transform_2, window_bounds = array<i64: 1, 8, 128>}]} {
    %c8_i32 = arith.constant 8 : i32
    %0 = arith.muli %arg0, %c8_i32 : i32
    %c8_i32_0 = arith.constant 8 : i32
    %1 = arith.muli %arg1, %c8_i32_0 : i32
    %2 = arith.addi %0, %1 : i32
    %c0_i32 = arith.constant 0 : i32
    %c8_i32_1 = arith.constant 8 : i32
    %3 = arith.addi %c0_i32, %c8_i32_1 : i32
    %c1_i32 = arith.constant 1 : i32
    scf.for %arg8 = %c0_i32 to %3 step %c1_i32  : i32 {
      %11 = arith.addi %2, %arg8 : i32
      %c15_i32 = arith.constant 15 : i32
      %12 = arith.minsi %11, %c15_i32 : i32
      %13 = arith.index_cast %12 : i32 to index
      %14 = memref.load %arg2[%13] : memref<16xi32, #tpu.memory_space<smem>>
      %c0_i32_13 = arith.constant 0 : i32
      %c63_i32 = arith.constant 63 : i32
      %15 = arith.maxsi %c0_i32_13, %14 : i32
      %16 = arith.minsi %c63_i32, %15 : i32
      %c0_i32_14 = arith.constant 0 : i32
      %17 = tpu.memref_slice %arg3[%16, %c0_i32_14] : memref<64x128xf32, #tpu.memory_space<any>> -> memref<1x128xf32, #tpu.memory_space<any>>
      %18 = tpu.memref_squeeze %17 : memref<1x128xf32, #tpu.memory_space<any>> -> memref<128xf32, #tpu.memory_space<any>>
      %c0_i32_15 = arith.constant 0 : i32
      %19 = tpu.memref_slice %arg6[%arg8, %c0_i32_15] : memref<8x128xf32, #tpu.memory_space<vmem>> -> memref<1x128xf32, #tpu.memory_space<vmem>>
      %20 = tpu.memref_squeeze %19 : memref<1x128xf32, #tpu.memory_space<vmem>> -> memref<128xf32, #tpu.memory_space<vmem>>
      tpu.enqueue_dma source(%18 : memref<128xf32, #tpu.memory_space<any>>) target(%20 : memref<128xf32, #tpu.memory_space<vmem>>) target_semaphore(%arg7 : memref<!tpu.dma_semaphore, #tpu.memory_space<semaphore_mem>>)
    }
    %c8_i32_2 = arith.constant 8 : i32
    %c0_i32_3 = arith.constant 0 : i32
    %c8_i32_4 = arith.constant 8 : i32
    %4 = arith.addi %c0_i32_3, %c8_i32_4 : i32
    %c1_i32_5 = arith.constant 1 : i32
    scf.for %arg8 = %c0_i32_3 to %4 step %c1_i32_5  : i32 {
      %c0_i32_13 = arith.constant 0 : i32
      %c0_i32_14 = arith.constant 0 : i32
      %11 = tpu.memref_slice %arg3[%c0_i32_13, %c0_i32_14] : memref<64x128xf32, #tpu.memory_space<any>> -> memref<1x128xf32, #tpu.memory_space<any>>
      %12 = tpu.memref_squeeze %11 : memref<1x128xf32, #tpu.memory_space<any>> -> memref<128xf32, #tpu.memory_space<any>>
      %c0_i32_15 = arith.constant 0 : i32
      %13 = tpu.memref_slice %arg6[%arg8, %c0_i32_15] : memref<8x128xf32, #tpu.memory_space<vmem>> -> memref<1x128xf32, #tpu.memory_space<vmem>>
      %14 = tpu.memref_squeeze %13 : memref<1x128xf32, #tpu.memory_space<vmem>> -> memref<128xf32, #tpu.memory_space<vmem>>
      tpu.wait_dma2 semaphore(%arg7 : memref<!tpu.dma_semaphore, #tpu.memory_space<semaphore_mem>>) src(%12 : memref<128xf32, #tpu.memory_space<any>>) dst(%14 : memref<128xf32, #tpu.memory_space<vmem>>)
    }
    %c8_i32_6 = arith.constant 8 : i32
    %c0 = arith.constant 0 : index
    %c0_7 = arith.constant 0 : index
    %5 = vector.load %arg6[%c0, %c0_7] : memref<8x128xf32, #tpu.memory_space<vmem>>, vector<8x128xf32>
    %c0_8 = arith.constant 0 : index
    %c0_9 = arith.constant 0 : index
    %6 = vector.load %arg4[%c0_8, %c0_9] : memref<8x128xf32, #tpu.memory_space<vmem>>, vector<8x128xf32>
    %7 = arith.addf %5, %6 : vector<8x128xf32>
    %c0_10 = arith.constant 0 : index
    %c0_11 = arith.constant 0 : index
    %c0_12 = arith.constant 0 : index
    %8 = vector.load %arg5[%c0_10, %c0_11, %c0_12] : memref<1x8x128xf32, #tpu.memory_space<vmem>>, vector<1x8x128xf32>
    %9 = vector.shape_cast %8 : vector<1x8x128xf32> to vector<8x128xf32>
    %10 = vector.shape_cast %7 : vector<8x128xf32> to vector<1x8x128xf32>
    tpu.vector_store %arg5[%c0_10, %c0_11, %c0_12], %10 {strides = array<i32>} : memref<1x8x128xf32, #tpu.memory_space<vmem>>, vector<1x8x128xf32>,
    return
  }
  func.func @transform_1(%arg0: i32, %arg1: i32, %arg2: memref<16xi32, #tpu.memory_space<smem>>) -> (i32, i32) {
    %c0_i32 = arith.constant 0 : i32
    %c0_i32_0 = arith.constant 0 : i32
    return %arg1, %c0_i32 : i32, i32
  }
  func.func @transform_2(%arg0: i32, %arg1: i32, %arg2: memref<16xi32, #tpu.memory_space<smem>>) -> (i32, i32, i32) {
    %c0_i32 = arith.constant 0 : i32
    %c0_i32_0 = arith.constant 0 : i32
    return %arg0, %arg1, %c0_i32 : i32, i32, i32
  }
}

</mosaic_0001>

<bundles_post_ra>
// kernel: tpu_custom_call.1
= control target key start
LH: loop header
LB: loop body
LE: loop exit
PB: predicated region body
PF: predicated region fallthrough
CT: control target
= control target key end

     0   :  { %s544_s12 = smov [#allocation5]   ;;  %s725_s0 = inlined_call_operand.hbm [shape: s32[16], index: 0, kind: input, shape index: {}]   ;;  %s726_s1 = inlined_call_operand.hbm [shape: f32[64,128], index: 1, kind: input, shape index: {}]   ;;  %s727_s2 = inlined_call_operand.hbm [shape: f32[16,128], index: 2, kind: input, shape index: {}]   ;;  %s728_s3 = inlined_call_operand.hbm [shape: f32[2,8,128], index: 3, kind: output, shape index: {}]  }
   0x1   :  { %9 = dma.hbm_to_smem %s725_s0, 16, %s544_s12, [#allocation4] }
   0x2   :  { %500 = dma.done.wait [#allocation4], 16 }
   0x3   :  { %501 = vsyncadd [#allocation4], 4294967280 }
   0x4   :  { %11 = sfence }
   0x5   :  { %12 = vsyncpa [#allocation7], 0 }
   0x6   :  { %13 = vsyncpa [#allocation8], 0 }
   0x7   :  { %15 = vsyncpa [#allocation8 + $0x1], 0  ;;  %s571_s15 = smov 0   ;;  %s573_s16 = smov 0  }
   0x8   :  { %s575_s17 = smov 0   ;;  %s577_s18 = smov 0  }
   0x9   :  { %s579_s19 = smov 0   ;;  %s581_s20 = smov 0  }
   0xa LB: > { %s282_s0 = sadd.s32 4294967295, %s534_s20   ;;  %s283_s21 = sadd.s32 4294967294, %s534_s20   ;;  %s534_s20 = sphi %s581_s20, %s21_s20   ;;  %s530_s19 = sphi %s579_s19, %s738_s19   ;;  %s526_s18 = sphi %s577_s18, %s737_s18   ;;  %s522_s17 = sphi %s575_s17, %s736_s17   ;;  %s518_s16 = sphi %s573_s16, %s735_s16   ;;  %s514_s15 = sphi %s571_s15, %s734_s15  }
   0xb   : > { %s33_s22 = sadd.s32 1, %s530_s19  ;;  %s68_s23 = sadd.s32 1, %s522_s17 }
   0xc   : > { %p35_p0 = scmp.ge.s32.totalorder %s33_s22, 2  ;;  %p78_p1 = scmp.ne.s32.totalorder %s522_s17, %s518_s16 }
   0xd   : > { %p79_p2 = scmp.eq.s32.totalorder %s282_s0, 1  ;;  %p84_p3 = scmp.ne.s32.totalorder %s518_s16, %s514_s15 }
   0xe   : > { %s740_s22 = smov (%p35_p0, %s33_s22), 0  ;;  %p85_p5 = scmp.eq.s32.totalorder %s283_s21, 1 }
   0xf   : > { %p611_p4 = por %p79_p2, %p78_p1  ;;  %s63_s25 = ssub.s32 %s530_s19, %s740_s22 }
  0x10   : > { %p284_p6 = scmp.ge.s32.totalorder %s534_s20, 1  ;;  %p66_p7 = scmp.eq.s32.totalorder %s63_s25, 0 }
  0x11   : > { %p618_p8 = por %p85_p5, %p84_p3  ;;  %p92_p9 = scmp.lt.s32.totalorder %s534_s20, 3 }
  0x12   : > { %s624_s27 = scalar_select %p66_p7, %s522_s17, %s68_s23  }
  0x13   : > { %p626_p10 = pnand %p284_p6, %p92_p9  ;;  %p630_p11 = scmp.eq.s32.totalorder %s282_s0, 0 }
  0x14   : > { %s545_s30 = smov [#allocation6]  }
  0x15   : > { %p309_p12 = pneg %p626_p10  ;;  %s107_s4 = sshll.u32 %s545_s30, 4  ;;  %s108_s4 = int_to_ptr.vmem [resolvable:$true] %s107_s4 }
  0x16   : > { %s405_s5 = scalar_lea.vmem %s108_s4, 128  ;;  %p413_p5 = scmp.lt.s32.totalorder %s108_s4, %s108_s4 }
  0x17   : > { %p310_p13 = pnand %p630_p11, %p309_p12  ;;  %p406_p1 = scmp.ne.s32.totalorder %s108_s4, %s405_s5 }
  0x18   : > { %p414_p6 = scmp.lt.s32.totalorder %s405_s5, %s405_s5 }
  0x19   : > { %p396_p0 = pneg %p310_p13 }
  0x1a   : > { %p415_p7 = por %p414_p6, %p413_p5 }
  0x1b   : > { %p408_p2 = pnand %p406_p1, %p396_p0 }
  0x1d   : > { %p409_p3 = pneg %p408_p2 }
  0x1f   : > { %p416_p9 = pnand %p415_p7, %p409_p3 }
  0x21   : > { %419 = shalt.err (!%p416_p9)
}
  0x22   : > { %312 = dma.hbm_to_vmem [thread:$0]  (!%p310_p13), %s727_s2, 128, %s108_s4, [#allocation7]  }
  0x23   : > { %120 = sbr.rel (%p626_p10) target bundleno = 115 (0x73), region = 24 }
  0x28   : > { %503 = dma.done.wait (%p630_p11), [#allocation7], 128  }
  0x29   : > { %505 = vsyncadd (%p630_p11), [#allocation7], 4294967168  ;;  %s132_s8 = sand.u32 1, %s518_s16   ;;  %s654_s12 = smov 0  }
  0x2a   : > { %s651_s10 = sshll.u32 %s132_s8, 3 }
  0x2b   : > { %s134_s11 = scalar_lea.vmem [#allocation9], %s651_s10 }
  0x2c LB: >> { %s733_s9 = sshll.u32 %s526_s18, 3  ;;  %s154_s0 = scalar_lea.vmem [#allocation2], %s538_s12  ;;  %s538_s12 = sphi %s654_s12, %s143_s12  }
  0x2d   : >> { %s144_s13 = sadd.s32 %s538_s12, %s733_s9  ;;  %s162_s21 = sshll.u32 %s154_s0, 4  ;;  %s163_s21 = int_to_ptr.vmem [resolvable:$true] %s162_s21 }
  0x2e   : >> { %p145_p10 = scmp.lt.s32.totalorder %s144_s13, 15  ;;  %s422_s6 = scalar_lea.hbm %s726_s1, 1024 }
  0x30   : >> { %s742_s13 = smov (!%p145_p10, %s144_s13), 15 }
  0x31   : >> { %s147_s14 = sld [smem:[#allocation5 + %s742_s13]] }
  0x37   : >> { %p148_p11 = scmp.gt.s32.totalorder %s147_s14, 0  ;;  %p290_p12 = scmp.lt.s32.totalorder %s147_s14, 63 }
  0x39   : >> { %s744_s14 = smov (!%p148_p11, %s147_s14), 0 }
  0x3a   : >> { %s746_s14 = smov (!%p290_p12, %s744_s14), 63 }
  0x3b   : >> { %s295_s23 = sshll.u32 %s746_s14, 4 }
  0x3c   : >> { %s153_s29 = scalar_lea.hbm %s726_s1, %s295_s23 }
  0x3d   : >> { %s420_s30 = scalar_lea.hbm %s153_s29, 16  ;;  %p423_p0 = scmp.lt.s32.totalorder %s153_s29, %s726_s1 }
  0x3e   : >> { %p421_p13 = scmp.ne.s32.totalorder %s153_s29, %s420_s30  ;;  %p424_p1 = scmp.lt.s32.totalorder %s422_s6, %s420_s30 }
  0x40   : >> { %p425_p2 = por %p424_p1, %p423_p0 }
  0x42   : >> { %p426_p3 = pnand %p425_p2, %p421_p13 }
  0x44   : >> { %429 = shalt.err (!%p426_p3)  }
  0x45   : >> { %s430_s0 = scalar_lea.vmem %s163_s21, 16  ;;  %s546_s14 = smov [#allocation2]  }
  0x46   : >> { %p431_p5 = scmp.ne.s32.totalorder %s163_s21, %s430_s0  ;;  %s432_s9 = sshll.u32 %s546_s14, 4  ;;  %s433_s9 = int_to_ptr.vmem [resolvable:$false] %s432_s9 }
  0x47   : >> { %s434_s23 = scalar_lea.vmem %s433_s9, 128  ;;  %p435_p6 = scmp.lt.s32.totalorder %s163_s21, %s433_s9 }
  0x48   : >> { %p436_p7 = scmp.lt.s32.totalorder %s434_s23, %s430_s0 }
  0x4a   : >> { %p437_p9 = por %p436_p7, %p435_p6 }
  0x4c   : >> { %p438_p10 = pnand %p437_p9, %p431_p5 }
  0x4e   : >> { %441 = shalt.err (!%p438_p10)  }
  0x4f   : >> { %165 = dma.hbm_to_vmem [thread:$0]  %s153_s29, 16, %s163_s21, [#allocation3] }
  0x50   : >> { %s143_s12 = sadd.s32 1, %s538_s12  }
  0x51   : >> { %p140_p11 = scmp.ge.s32.totalorder %s143_s12, 8  }
  0x52   : > { %s540_s25 = smov (%p140_p11), 0  }
  0x53   : > { %142 = sbr.rel (!%p140_p11) target bundleno = 44 (0x2c), region = 82 }
  0x58 LB: >> { %506 = dma.done.wait [#allocation3], 16  ;;  %s542_s25 = sphi %s540_s25, %s171_s25  }
  0x59   : >> { %507 = vsyncadd [#allocation3], 4294967280  ;;  %s171_s25 = sadd.s32 1, %s542_s25  }
  0x5a   : >> { %p168_p12 = scmp.ge.s32.totalorder %s171_s25, 8  }
  0x5b   : > { %v174_v0 = vld [vmem:[#allocation2] sm:$0xff] (%p168_p12)  ;;  %v175_v1 = vld [vmem:[#allocation6] sm:$0xff] (%p168_p12)  ;;  %s297_s9 = sshll.u32 (%p168_p12), %s526_s18, 7  ;;  %s193_s29 = sshll.u32 (%p168_p12), %s134_s11, 4  ;;  %s194_s29 = int_to_ptr.vmem [resolvable:$true] %s193_s29 }
  0x5c   : > { %170 = sbr.rel (!%p168_p12) target bundleno = 88 (0x58), region = 93  ;;  %v176_v2 = vadd.f32 (%p168_p12), %v175_v1, %v174_v0  ;;  %s679_s28 = scalar_lea.hbm (%p168_p12), %s728_s3, %s297_s9 }
  0x5d   : > { %s179_s30 = scalar_lea.sflag (%p168_p12), [#allocation8], %s132_s8  ;;  %s442_s4 = scalar_lea.vmem (%p168_p12), %s194_s29, 128 }
  0x5e   : > { %177 = vst [vmem:[%s134_s11] sm:$0xff] (%p168_p12), %v176_v2  ;;  %p443_p13 = scmp.ne.s32.totalorder (%p168_p12), %s194_s29, %s442_s4  ;;  %s547_s5 = smov (%p168_p12), [#allocation9]  }
  0x5f   : > { %s446_s18 = sshll.u32 (%p168_p12), %s547_s5, 4  ;;  %s447_s18 = int_to_ptr.vmem [resolvable:$false] %s446_s18 }
  0x60   : > { %p444_p0 = pnand (%p168_p12), %p443_p13, %p611_p4  ;;  %s448_s6 = scalar_lea.vmem (%p168_p12), %s447_s18, 256 }
  0x61   : > { %p449_p2 = scmp.lt.s32.totalorder %s194_s29, %s447_s18  ;;  %p450_p3 = scmp.lt.s32.totalorder %s448_s6, %s442_s4 }
  0x62   : > { %p445_p1 = pneg %p444_p0 }
  0x63   : > { %p451_p5 = por %p450_p3, %p449_p2 }
  0x65   : > { %p452_p6 = pnand %p451_p5, %p445_p1 }
  0x67   : > { %455 = shalt.err (!%p452_p6)
}
  0x68   : > { %s456_s10 = scalar_lea.hbm %s679_s28, 128  ;;  %s460_s7 = scalar_lea.hbm %s728_s3, 256 }
  0x69   : > { %p457_p7 = scmp.ne.s32.totalorder %s679_s28, %s456_s10  ;;  %p461_p11 = scmp.lt.s32.totalorder %s679_s28, %s728_s3 }
  0x6a   : > { %p462_p12 = scmp.lt.s32.totalorder %s460_s7, %s456_s10 }
  0x6b   : > { %p458_p9 = pnand %p457_p7, %p611_p4 }
  0x6c   : > { %p463_p13 = por %p462_p12, %p461_p11 }
  0x6d   : > { %p459_p10 = pneg %p458_p9 }
  0x6f   : > { %p464_p0 = pnand %p463_p13, %p459_p10 }
  0x71   : > { %467 = shalt.err (!%p464_p0)
}
  0x72   : > { %307 = dma.vmem_to_hbm [thread:$0]  (%p611_p4), %s194_s29, 128, %s679_s28, %s179_s30  }
  0x73 PF: > { %p319_p1 = scmp.ge.s32.totalorder %s534_s20, 2  ;;  %s205_s14 = sand.u32 1, %s514_s15  }
  0x74   : > { %s206_s23 = scalar_lea.sflag [#allocation8], %s205_s14 }
  0x75   : > { %p314_p2 = pnand %p319_p1, %p618_p8 }
  0x77   : > { %p315_p3 = pneg %p314_p2 }
  0x79   : > { %509 = dma.done.wait (%p315_p3), %s206_s23, 128  }
  0x7a   : > { %511 = vsyncadd (%p315_p3), %s206_s23, 4294967168  ;;  %s21_s20 = sadd.s32 1, %s534_s20   ;;  %s734_s15 = smov %s518_s16 }
  0x7b   : > { %p18_p5 = scmp.ge.s32.totalorder %s21_s20, 4   ;;  %s735_s16 = smov %s522_s17 }
  0x7c   : > { %s736_s17 = smov %s624_s27  ;;  %s737_s18 = smov %s530_s19 }
  0x7d   : > { %s738_s19 = smov %s740_s22  ;;  %20 = sbr.rel (!%p18_p5) target bundleno = 10 (0xa), region = 104 }
  0x82   :  { %211 = vsyncpa [#allocation7], 1 }
  0x83   :  { %213 = vsyncpa [#allocation7 + $0x1], 1 }
  0x84   :  { %214 = vsyncpa [#allocation8], 1 }
  0x85   :  { %216 = vsyncpa [#allocation8 + $0x1], 1 }
  0x86   :  { %217 = vsyncmov [#allocation3] }
  0x89   :  { %s218_s24 = vpop.sfrf %217 }
  0x8a   :  { %p300_p4 = scmp.ne.s32.totalorder %s218_s24, 0 }
  0x8c   :  { %222 = shalt.err (%p300_p4)  }

</bundles_post_ra>
